<compile_context>
chip_gen: v7x
topology: tpu7x:2x2x1
jax: 0.10.0
libtpu: 0.0.40
codegen_flags: <defaults>
</compile_context>

<pallas_src>
import functools

import jax
import jax.numpy as jnp
from jax import lax
from jax.experimental import pallas as pl
from jax.experimental.pallas import tpu as pltpu

VOCAB = 100
VOCAB_PAD = 128  # pad vocab to one full lane width


def _round_up(x, m):
    return (x + m - 1) // m * m


def _bond_encoder_kernel(idx_ref, emb_ref, out_ref, onehot_ref, *, num_feat):
    # idx_ref   : (tile_e, F) int32        -- this tile's bond-feature indices
    # emb_ref   : (F*128, H)  bf16/f32     -- vocab-padded, flattened tables
    # out_ref   : (tile_e, H) out dtype    -- output tile, natural [E, H] layout
    # onehot_ref: (tile_e, F*128) VMEM scratch, same dtype as emb_ref
    tile_e = idx_ref.shape[0]
    # Lane iota 0..127, shared by all features (loop-invariant, cheap VPU fill;
    # NOT cached in a scratch under pl.when(step==0) because on megacore parts
    # the second TensorCore never executes step 0).
    col = lax.broadcasted_iota(jnp.int32, (tile_e, VOCAB_PAD), 1)
    for f in range(num_feat):
        # One 128-lane one-hot band per feature; 0/1 are exact in bf16.
        band = (idx_ref[:, f:f + 1] == col).astype(onehot_ref.dtype)
        onehot_ref[:, f * VOCAB_PAD:(f + 1) * VOCAB_PAD] = band
    # Single fused MXU matmul gathers + sums all F features at once.
    out_ref[...] = jnp.dot(onehot_ref[...], emb_ref[...],
                           preferred_element_type=jnp.float32
                           ).astype(out_ref.dtype)


def prepare_bond_tables(emb_tables, dtype=jnp.bfloat16):
    """One-time table prep (model init): pad vocab 100 -> 128 and flatten.

    emb_tables: float [F, 100, H]  ->  [F*128, H] in `dtype`.
    bf16 (default) gives the fast MXU path; pass jnp.float32 for bit-exact
    embedding weights.
    """
    num_feat, vocab, hidden = emb_tables.shape
    assert vocab == VOCAB
    padded = jnp.pad(emb_tables.astype(dtype),
                     ((0, 0), (0, VOCAB_PAD - vocab), (0, 0)))  # (F, 128, H)
    return padded.reshape(num_feat * VOCAB_PAD, hidden)          # (F*128, H)


def _pick_tile_e(E, F, H, table_itemsize):
    """H-/dtype-aware edge-tile size from a per-step VMEM budget."""
    K = F * VOCAB_PAD
    h_lanes = _round_up(max(H, 128), 128)          # lane-padded out width
    per_edge = (K * table_itemsize                 # one-hot scratch (1 buffer)
                + 2 * 128 * 4                      # idx tile, 2 bufs, lane-padded
                + 2 * h_lanes * 4)                 # out tile, 2 bufs, f32
    budget = 10 * 1024 * 1024                      # fits v5e's 16 MiB scoped VMEM
    cap = max(256, min(4096, (budget // per_edge) // 256 * 256))
    if E <= 2 * cap:
        # Small/medium E: at least 2 tiles so the parallel axis can use both
        # TensorCores on megacore parts (v7x), without over-padding.
        return max(8, _round_up(pl.cdiv(E, 2), 8 if E <= 2048 else 256))
    return cap


def bond_encoder_forward(edge_attr, emb, *, tile_e=None, out_dtype=jnp.float32):
    """edge_attr: int [E] or [E, F]; emb: output of prepare_bond_tables.

    Returns `out_dtype` [E, H] = sum_f emb_f[edge_attr[:, f]].
    (Pass out_dtype=jnp.bfloat16 to halve output HBM traffic if the consumer
    tolerates it.)
    """
    if edge_attr.ndim == 1:
        edge_attr = edge_attr[:, None]
    edge_attr = edge_attr.astype(jnp.int32)
    E, F = edge_attr.shape
    K_full, H = emb.shape
    assert F * VOCAB_PAD <= K_full, "more edge features than embedding tables"
    K = F * VOCAB_PAD
    emb_used = emb[:K, :]                                        # (F*128, H)

    if tile_e is None:
        tile_e = _pick_tile_e(E, F, H, jnp.dtype(emb_used.dtype).itemsize)
    assert tile_e % 8 == 0 and tile_e > 0

    num_tiles = pl.cdiv(E, tile_e)
    e_pad = num_tiles * tile_e
    idx = edge_attr
    if e_pad != E:
        # Pad with index 0 (a valid row); padded rows are sliced off below.
        idx = jnp.pad(edge_attr, ((0, e_pad - E), (0, 0)))
    # TODO(synk): out-of-range indices are silently swallowed (100..127 hit the
    # zero-padded rows, >=128 / negative give an all-zero one-hot band) instead
    # of erroring like torch.nn.Embedding; clamp or pl.debug_check if untrusted.

    kernel = functools.partial(_bond_encoder_kernel, num_feat=F)

    out = pl.pallas_call(
        kernel,
        out_shape=jax.ShapeDtypeStruct((e_pad, H), out_dtype),
        grid_spec=pltpu.PrefetchScalarGridSpec(
            num_scalar_prefetch=0,
            grid=(num_tiles,),
            in_specs=[
                # one (tile_e, F) tile of indices per step
                pl.BlockSpec((tile_e, F), lambda i: (i, 0)),
                # small flattened tables, resident across all steps
                pl.BlockSpec((K, H), lambda i: (0, 0)),
            ],
            out_specs=pl.BlockSpec((tile_e, H), lambda i: (i, 0)),
            scratch_shapes=[pltpu.VMEM((tile_e, K), emb_used.dtype)],
        ),
        compiler_params=pltpu.CompilerParams(
            dimension_semantics=("parallel",)),
    )(idx, emb_used)

    return out if e_pad == E else out[:E]


def bond_encoder_reference(edge_attr, emb_tables):
    if edge_attr.ndim == 1:
        edge_attr = edge_attr[:, None]
    out = 0
    for i in range(edge_attr.shape[1]):
        out = out + emb_tables[i][edge_attr[:, i]]
    return out.astype(jnp.float32)


if __name__ == "__main__":
    key = jax.random.PRNGKey(0)
    k_emb, k_idx = jax.random.split(key)

    hidden_channels = 32
    num_feat = 3
    E = 16  # number of edges (small demo shape)

    # torch.nn.Embedding default init: N(0, 1); deterministic via PRNGKey(0).
    emb_tables = jax.random.normal(
        k_emb, (num_feat, VOCAB, hidden_channels), dtype=jnp.float32)
    edge_attr = jax.random.randint(
        k_idx, (E, num_feat), minval=0, maxval=VOCAB, dtype=jnp.int32)

    # Table prep happens once (model init), not per forward call.
    emb_bf16 = prepare_bond_tables(emb_tables)                    # bf16 default
    rounded = emb_tables.astype(jnp.bfloat16).astype(jnp.float32)  # same rounding

    # [E, F] path (bf16 tables: only difference vs f32 is weight rounding,
    # which the reference below shares, so the comparison is tight).
    out = jax.block_until_ready(bond_encoder_forward(edge_attr, emb_bf16))
    ref = bond_encoder_reference(edge_attr, rounded)
    assert out.shape == (E, hidden_channels)
    assert jnp.allclose(out, ref, atol=1e-5, rtol=1e-5), "bf16 path mismatch"

    # 1-D edge_attr path (unsqueeze -> single feature / single table)
    out1 = jax.block_until_ready(bond_encoder_forward(edge_attr[:, 0], emb_bf16))
    ref1 = bond_encoder_reference(edge_attr[:, 0], rounded)
    assert jnp.allclose(out1, ref1, atol=1e-5, rtol=1e-5), "1-D path mismatch"

    # Exact-f32 table path still matches the unrounded reference bit-tightly.
    emb_f32 = prepare_bond_tables(emb_tables, dtype=jnp.float32)
    out32 = jax.block_until_ready(bond_encoder_forward(edge_attr, emb_f32))
    ref32 = bond_encoder_reference(edge_attr, emb_tables)
    assert jnp.allclose(out32, ref32, atol=1e-5, rtol=1e-5), "f32 path mismatch"

    print("KERNEL_OK")
</pallas_src>

<mosaic_0001>
module attributes {stable_mosaic.version = 11 : i64} {
  func.func @_bond_encoder_kernel(%arg0: i32, %arg1: memref<8x3xi32, #tpu.memory_space<vmem>>, %arg2: memref<384x32xbf16, #tpu.memory_space<vmem>>, %arg3: memref<8x32xf32, #tpu.memory_space<vmem>>, %arg4: memref<8x384xbf16, #tpu.memory_space<vmem>>) attributes {dimension_semantics = [#tpu.dimension_semantics<parallel>], iteration_bounds = array<i64: 2>, scalar_prefetch = 0 : i64, scratch_operands = 1 : i64, tpu.core_type = #tpu.core_type<tc>, window_params = [{transform_indices = @transform_0, window_bounds = array<i64: 8, 3>}, {pipeline_mode = #tpu.pipeline_mode<synchronous>, transform_indices = @transform_1, window_bounds = array<i64: 384, 32>}, {transform_indices = @transform_2, window_bounds = array<i64: 8, 32>}]} {
    %0 = tpu.iota {dimensions = array<i32: 1>} : vector<8x128xi32>
    %c0 = arith.constant 0 : index
    %c0_0 = arith.constant 0 : index
    %1 = vector.load %arg1[%c0, %c0_0] : memref<8x3xi32, #tpu.memory_space<vmem>>, vector<8x1xi32>
    %2 = vector.broadcast %1 : vector<8x1xi32> to vector<8x128xi32>
    %3 = arith.cmpi eq, %2, %0 : vector<8x128xi32>
    %4 = arith.extui %3 : vector<8x128xi1> to vector<8x128xi32>
    %5 = arith.sitofp %4 : vector<8x128xi32> to vector<8x128xf32>
    %6 = arith.truncf %5 : vector<8x128xf32> to vector<8x128xbf16>
    %c0_1 = arith.constant 0 : index
    %c0_2 = arith.constant 0 : index
    %7 = vector.load %arg4[%c0_1, %c0_2] : memref<8x384xbf16, #tpu.memory_space<vmem>>, vector<8x128xbf16>
    tpu.vector_store %arg4[%c0_1, %c0_2], %6 {strides = array<i32>} : memref<8x384xbf16, #tpu.memory_space<vmem>>, vector<8x128xbf16>,
    %c0_3 = arith.constant 0 : index
    %c1 = arith.constant 1 : index
    %8 = vector.load %arg1[%c0_3, %c1] : memref<8x3xi32, #tpu.memory_space<vmem>>, vector<8x1xi32>
    %9 = vector.broadcast %8 : vector<8x1xi32> to vector<8x128xi32>
    %10 = arith.cmpi eq, %9, %0 : vector<8x128xi32>
    %11 = arith.extui %10 : vector<8x128xi1> to vector<8x128xi32>
    %12 = arith.sitofp %11 : vector<8x128xi32> to vector<8x128xf32>
    %13 = arith.truncf %12 : vector<8x128xf32> to vector<8x128xbf16>
    %c0_4 = arith.constant 0 : index
    %c128 = arith.constant 128 : index
    %14 = vector.load %arg4[%c0_4, %c128] : memref<8x384xbf16, #tpu.memory_space<vmem>>, vector<8x128xbf16>
    tpu.vector_store %arg4[%c0_4, %c128], %13 {strides = array<i32>} : memref<8x384xbf16, #tpu.memory_space<vmem>>, vector<8x128xbf16>,
    %c0_5 = arith.constant 0 : index
    %c2 = arith.constant 2 : index
    %15 = vector.load %arg1[%c0_5, %c2] : memref<8x3xi32, #tpu.memory_space<vmem>>, vector<8x1xi32>
    %16 = vector.broadcast %15 : vector<8x1xi32> to vector<8x128xi32>
    %17 = arith.cmpi eq, %16, %0 : vector<8x128xi32>
    %18 = arith.extui %17 : vector<8x128xi1> to vector<8x128xi32>
    %19 = arith.sitofp %18 : vector<8x128xi32> to vector<8x128xf32>
    %20 = arith.truncf %19 : vector<8x128xf32> to vector<8x128xbf16>
    %c0_6 = arith.constant 0 : index
    %c256 = arith.constant 256 : index
    %21 = vector.load %arg4[%c0_6, %c256] : memref<8x384xbf16, #tpu.memory_space<vmem>>, vector<8x128xbf16>
    tpu.vector_store %arg4[%c0_6, %c256], %20 {strides = array<i32>} : memref<8x384xbf16, #tpu.memory_space<vmem>>, vector<8x128xbf16>,
    %c0_7 = arith.constant 0 : index
    %c0_8 = arith.constant 0 : index
    %22 = vector.load %arg4[%c0_7, %c0_8] : memref<8x384xbf16, #tpu.memory_space<vmem>>, vector<8x384xbf16>
    %c0_9 = arith.constant 0 : index
    %c0_10 = arith.constant 0 : index
    %23 = vector.load %arg2[%c0_9, %c0_10] : memref<384x32xbf16, #tpu.memory_space<vmem>>, vector<384x32xbf16>
    %cst = arith.constant dense<0.000000e+00> : vector<8x32xf32>
    %24 = tpu.matmul %22, %23, %cst {dimension_numbers = #tpu.dot_dimension_numbers<[1], [0], [0], [1], [0, 0, 1, 1], [], []>} : vector<8x384xbf16>, vector<384x32xbf16>, vector<8x32xf32> -> vector<8x32xf32>
    %c0_11 = arith.constant 0 : index
    %c0_12 = arith.constant 0 : index
    %25 = vector.load %arg3[%c0_11, %c0_12] : memref<8x32xf32, #tpu.memory_space<vmem>>, vector<8x32xf32>
    tpu.vector_store %arg3[%c0_11, %c0_12], %24 {strides = array<i32>} : memref<8x32xf32, #tpu.memory_space<vmem>>, vector<8x32xf32>,
    return
  }
  func.func @transform_0(%arg0: i32) -> (i32, i32) {
    %c0_i32 = arith.constant 0 : i32
    %c0_i32_0 = arith.constant 0 : i32
    return %arg0, %c0_i32 : i32, i32
  }
  func.func @transform_1(%arg0: i32) -> (i32, i32) {
    %c0_i32 = arith.constant 0 : i32
    %c0_i32_0 = arith.constant 0 : i32
    %c0_i32_1 = arith.constant 0 : i32
    return %c0_i32, %c0_i32_0 : i32, i32
  }
  func.func @transform_2(%arg0: i32) -> (i32, i32) {
    %c0_i32 = arith.constant 0 : i32
    %c0_i32_0 = arith.constant 0 : i32
    return %arg0, %c0_i32 : i32, i32
  }
}

</mosaic_0001>

<bundles_post_ra>
// kernel: tpu_custom_call.1
= control target key start
LH: loop header
LB: loop body
LE: loop exit
PB: predicated region body
PF: predicated region fallthrough
CT: control target
= control target key end

     0   :  { %7 = vsyncpa [#allocation4], 0  ;;  %s964_s0 = inlined_call_operand.vmem [shape: s32[16,3], index: 0, kind: input, shape index: {}]   ;;  %s965_s1 = inlined_call_operand.vmem [shape: bf16[384,32], index: 1, kind: input, shape index: {}]   ;;  %s966_s2 = inlined_call_operand.hbm [shape: f32[16,32], index: 2, kind: output, shape index: {}]  }
   0x1   :  { %9 = vsyncpa [#allocation4 + $0x1], 0  ;;  %s780_s9 = smov 0   ;;  %s782_s10 = smov 0  }
   0x2   :  { %s784_s11 = smov 0   ;;  %s786_s12 = smov 0  }
   0x3 LB: > { %s801_s13 = sadd.s32 4294967295, %s757_s12   ;;  %s529_s14 = sadd.s32 4294967294, %s757_s12   ;;  %s757_s12 = sphi %s786_s12, %s972_s12   ;;  %s753_s11 = sphi %s784_s11, %s971_s11   ;;  %s749_s10 = sphi %s782_s10, %s970_s10   ;;  %s745_s9 = sphi %s780_s9, %s969_s9  }
   0x4   : > { %s805_s15 = sadd.s32 1, %s757_s12   ;;  %s69_s16 = sadd.s32 1, %s753_s11 }
   0x5   : > { %s66_s17 = ssub.s32 %s757_s12, %s805_s15  ;;  %p79_p0 = scmp.ne.s32.totalorder %s753_s11, %s749_s10 }
   0x6   : > { %p67_p1 = scmp.eq.s32.totalorder %s66_s17, 0  ;;  %p80_p2 = scmp.eq.s32.totalorder %s801_s13, 1 }
   0x7   : > { %p85_p3 = scmp.ne.s32.totalorder %s749_s10, %s745_s9  ;;  %p86_p4 = scmp.eq.s32.totalorder %s529_s14, 1 }
   0x8   : > { %s816_s18 = scalar_select %p67_p1, %s753_s11, %s69_s16  }
   0x9   : > { %p818_p5 = por %p80_p2, %p79_p0  ;;  %p822_p6 = por %p86_p4, %p85_p3 }
   0xa   : > { %p532_p7 = scmp.ge.s32.totalorder %s757_s12, 1  ;;  %p114_p8 = scmp.lt.s32.totalorder %s757_s12, 3 }
   0xc   : > { %p115_p9 = pnand %p532_p7, %p114_p8 }
   0xd   : > { %p135_p10 = scmp.lt.s32.totalorder (!%p115_p9), %s801_s13, 1  ;;  %v759_v0 = vmov (!%p115_p9), 0   ;;  %v760_v1 = vmov (!%p115_p9), 2   ;;  %v668_v2 = vld [vmem:[%s965_s1 + $0x40] sm:$0xff] (!%p115_p9)   ;;  %v761_v3 = vmov (!%p115_p9), 0.0   ;;  %v671_v6 = vld [vmem:[%s965_s1 + $0x48] sm:$0xff] (!%p115_p9)   ;;  %v140_v29 = vlaneseq (!%p115_p9) }
   0xe   : > { %118 = sbr.rel (%p115_p9) target bundleno = 405 (0x195), region = 28  ;;  %664 = vset.pattern.permute.xlu0 (!%p115_p9), %v759_v0  ;;  %666 = vset.pattern.permute.xlu1 (!%p115_p9), %v760_v1  ;;  %v669_v4 = vld [vmem:[%s965_s1] sm:$0xff] (!%p115_p9)   ;;  %v672_v7 = vld [vmem:[%s965_s1 + $0x8] sm:$0xff] (!%p115_p9)   ;;  %v674_v10 = vld [vmem:[%s965_s1 + $0x50] sm:$0xff] (!%p115_p9)   ;;  %v762_v14 = vmov (!%p115_p9), 1   ;;  %vm763_vm0 = vmmov (!%p115_p9), 0  }
   0xf   : > { %600 = vmatprep.subr.bf16.mxu1 (!%p115_p9), %v761_v3  ;;  %569 = vmatprep.subr.bf16.mxu0 (!%p115_p9), %v668_v2  ;;  %v670_v5 = vld [vmem:[%s965_s1 + $0x80] sm:$0xff] (!%p115_p9)   ;;  %v673_v9 = vld [vmem:[%s965_s1 + $0x88] sm:$0xff] (!%p115_p9)   ;;  %v675_v11 = vld [vmem:[%s965_s1 + $0x10] sm:$0xff] (!%p115_p9)   ;;  %v141_v30 = vand.u32 (!%p115_p9), 127, %v140_v29  ;;  %s132_s8 = sand.u32 (!%p115_p9), 1, %s749_s10   ;;  %s566_s16 = sshll.u32 (!%p115_p9), %s801_s13, 7 }
  0x10   : > { %570 = vmatpush3.bf16.msra.mxu0 (!%p115_p9), %v669_v4  ;;  %601 = vmatpush3.bf16.msra.mxu1 (!%p115_p9), %v670_v5  ;;  %v676_v12 = vld [vmem:[%s965_s1 + $0x90] sm:$0xff] (!%p115_p9)   ;;  %v677_v13 = vld [vmem:[%s965_s1 + $0x58] sm:$0xff] (!%p115_p9)   ;;  %v680_v17 = vld [vmem:[%s965_s1 + $0x60] sm:$0xff] (!%p115_p9)   ;;  %s533_s14 = sshll.u32 (!%p115_p9), %s132_s8, 3  ;;  %vm454_vm4 = vcmask (!%p115_p9), 261120   ;;  %s922_s24 = scalar_lea.hbm (!%p115_p9), %s966_s2, %s566_s16 }
  0x11   : > { %571 = vmatprep.subr.bf16.mxu0 (!%p115_p9), %v671_v6  ;;  %602 = vmatprep.subr.bf16.mxu1 (!%p115_p9), %v761_v3  ;;  %v678_v15 = vld [vmem:[%s965_s1 + $0x18] sm:$0xff] (!%p115_p9)   ;;  %v681_v18 = vld [vmem:[%s965_s1 + $0x20] sm:$0xff] (!%p115_p9)   ;;  %v683_v20 = vld [vmem:[%s965_s1 + $0x68] sm:$0xff] (!%p115_p9)   ;;  %s134_s17 = scalar_lea.vmem (!%p115_p9), [#allocation3], %s533_s14  ;;  %s457_s25 = scalar_lea.sflag (!%p115_p9), [#allocation4], %s132_s8 }
  0x12   : > { %v679_v16 = vld [vmem:[%s965_s1 + $0x98] sm:$0xff] (!%p115_p9)   ;;  %v682_v19 = vld [vmem:[%s965_s1 + $0xa0] sm:$0xff] (!%p115_p9)   ;;  %v684_v21 = vld [vmem:[%s965_s1 + $0x28] sm:$0xff] (!%p115_p9)   ;;  %616 = vmatprep.mubr.msk.bf16.mxu1 (!%p115_p9), %vm763_vm0, %v761_v3  ;;  %s470_s21 = sshll.u32 (!%p115_p9), %s134_s17, 4  ;;  %s764_s26 = smov (!%p115_p9), [#allocation3]   ;;  %s924_s21 = int_to_ptr.vmem [resolvable:$true] %s470_s21 }
  0x13   : > { %v685_v22 = vld [vmem:[%s965_s1 + $0xa8] sm:$0xff] (!%p115_p9)   ;;  %v686_v23 = vld [vmem:[%s965_s1 + $0x70] sm:$0xff] (!%p115_p9)   ;;  %v689_v26 = vld [vmem:[%s965_s1 + $0x78] sm:$0xff] (!%p115_p9)   ;;  %s699_s27 = sshll.u32 (!%p115_p9), %s764_s26, 4  ;;  %s700_s27 = int_to_ptr.vmem [resolvable:$false] %s699_s27 }
  0x14   : > { %572 = vmatpush3.bf16.msra.mxu0 (!%p115_p9), %v672_v7  ;;  %603 = vmatpush3.bf16.msra.mxu1 (!%p115_p9), %v673_v9  ;;  %v687_v24 = vld [vmem:[%s965_s1 + $0x30] sm:$0xff] (!%p115_p9)   ;;  %v690_v27 = vld [vmem:[%s965_s1 + $0x38] sm:$0xff] (!%p115_p9)   ;;  %p702_p0 = scmp.lt.s32.totalorder (!%p115_p9), %s924_s21, %s700_s27 }
  0x15   : > { %s136_s23 = scalar_select %p135_p10, %s801_s13, 1  ;;  %573 = vmatprep.subr.bf16.mxu0 %v674_v10  ;;  %604 = vmatprep.subr.bf16.mxu1 %v761_v3  ;;  %v688_v25 = vld [vmem:[%s965_s1 + $0xb0] sm:$0xff]   ;;  %v691_v28 = vld [vmem:[%s965_s1 + $0xb8] sm:$0xff]  }
  0x16   : > { %s695_s13 = scalar_lea.vmem %s924_s21, 128 }
  0x17   : > { %s534_s28 = sshll.u32 %s136_s23, 3  ;;  %p696_p11 = scmp.ne.s32.totalorder %s924_s21, %s695_s13 }
  0x18   : > { %s138_s5 = scalar_lea.vmem %s964_s0, %s534_s28  ;;  %574 = vmatpush3.bf16.msra.mxu0 %v675_v11  ;;  %605 = vmatpush3.bf16.msra.mxu1 %v676_v12  ;;  %s701_s28 = scalar_lea.vmem %s700_s27, 256 }
  0x19   : > { %v142_v8 = vld [vmem:[%s138_s5] sm:$0xff]  ;;  %575 = vmatprep.subr.bf16.mxu0 %v677_v13  ;;  %606 = vmatprep.subr.bf16.mxu1 %v761_v3  ;;  %p697_p12 = pnand %p696_p11, %p818_p5  ;;  %p703_p1 = scmp.lt.s32.totalorder %s701_s28, %s695_s13 }
  0x1a   : > { %144 = vperm.xlu0 %664, %v142_v8   ;;  %162 = vperm.xlu1 %666, %v142_v8  }
  0x1b   : > { %p698_p13 = pneg %p697_p12  ;;  %p704_p2 = por %p703_p1, %p702_p0 }
  0x1c   : > { %576 = vmatpush3.bf16.msra.mxu0 %v678_v15  ;;  %607 = vmatpush3.bf16.msra.mxu1 %v679_v16 }
  0x1d   : > { %577 = vmatprep.subr.bf16.mxu0 %v680_v17  ;;  %608 = vmatprep.subr.bf16.mxu1 %v761_v3  ;;  %p705_p3 = pnand %p704_p2, %p698_p13 }
  0x1e   : > { %665 = vset.pattern.permute.xlu0 %v762_v14 }
  0x1f   : > { %153 = vperm.xlu0 %665, %v142_v8  }
  0x20   : > { %578 = vmatpush3.bf16.msra.mxu0 %v681_v18  ;;  %609 = vmatpush3.bf16.msra.mxu1 %v682_v19 }
  0x21   : > { %579 = vmatprep.subr.bf16.mxu0 %v683_v20  ;;  %610 = vmatprep.subr.bf16.mxu1 %v761_v3 }
  0x23   : > { %667 = vset.pattern.permute.xlu0 %v760_v1 }
  0x24   : > { %580 = vmatpush3.bf16.msra.mxu0 %v684_v21  ;;  %611 = vmatpush3.bf16.msra.mxu1 %v685_v22 }
  0x25   : > { %581 = vmatprep.subr.bf16.mxu0 %v686_v23  ;;  %612 = vmatprep.subr.bf16.mxu1 %v761_v3 }
  0x28   : > { %582 = vmatpush3.bf16.msra.mxu0 %v687_v24  ;;  %613 = vmatpush3.bf16.msra.mxu1 %v688_v25 }
  0x29   : > { %583 = vmatprep.subr.bf16.mxu0 %v689_v26  ;;  %614 = vmatprep.subr.bf16.mxu1 %v761_v3 }
  0x2c   : > { %584 = vmatpush3.bf16.msra.mxu0 %v690_v27  ;;  %615 = vmatpush3.bf16.msra.mxu1 %v691_v28 }
  0x99   : > { %v145_v31 = vpop.permute.xlu0 %144  ;;  %v163_v32 = vpop.permute.xlu1 %162 }
  0x9a   : > { %vm146_vm1 = vcmp.eq.s32.totalorder %v145_v31, %v141_v30  ;;  %vm164_vm2 = vcmp.eq.s32.totalorder %v163_v32, %v141_v30 }
  0x9b   : > { %v535_v33 = vsel %vm146_vm1, 1.0, %v761_v3  ;;  %v537_v34 = vsel %vm164_vm2, 1.0, %v761_v3 }
  0x9c   : > { %v149_v35 = vpack.c.bf16 %v535_v33, %v535_v33  ;;  %v167_v36 = vpack.c.bf16 %v537_v34, %v537_v34 }
  0x9e   : > { %150 = vst [vmem:[#allocation2] sm:$0xf] %v149_v35  ;;  %v154_v37 = vpop.permute.xlu0 %153  ;;  %168 = vst [vmem:[#allocation2 + $0x8] sm:$0xf] %v167_v36 }
  0x9f   : > { %vm155_vm3 = vcmp.eq.s32.totalorder %v154_v37, %v141_v30 }
  0xa0   : > { %v536_v38 = vsel %vm155_vm3, 1.0, %v761_v3 }
  0xa1   : > { %v158_v39 = vpack.c.bf16 %v536_v38, %v536_v38 }
  0xa3   : > { %159 = vst [vmem:[#allocation2 + $0x4] sm:$0xf] %v158_v39 }
  0xa5   : > { %v694_v40 = vld [vmem:[#allocation2 + $0x8] ss:$0 sps:$4 sm:$0xff]  }
  0xa6   : > { %617 = vmatmul.mubr.bf16.vlgmr.msra.gmra.mrb[0].mxu1 %v694_v40 }
  0xaa   : > { %v169_v41 = vld [vmem:[#allocation2] sm:$0xff] }
  0xab   : > { %v538_v42 = vcombine.low %v169_v41, %v169_v41  ;;  %v539_v43 = vcombine.high %v169_v41, %v169_v41 }
  0xad   : > { %406 = vmatprep.mubr.bf16.mxu0 %v539_v43 }
  0xae   : > { %407 = vmatmul.mubr.bf16.vlgmr.msra.gmra.mrb[0].mxu0 %v538_v42 }
 0x179   : > { %v448_v44 = vpop.f32.mrb[0].mxu1 }
 0x17a   : > { %v618_v45 = vpop.f32.mrb[1].mxu1 }
 0x17b   : > { %v451_v46 = vpop.f32.mrb[2].mxu1 }
 0x17c   : > { %v619_v47 = vpop.f32.mrb[3].mxu1 }
 0x181   : > { %v585_v48 = vpop.f32.mrb[0].mxu0 }
 0x182   : > { %v586_v49 = vpop.f32.mrb[1].mxu0 }
 0x183   : > { %v587_v50 = vadd.f32 %v586_v49, %v585_v48  ;;  %v588_v51 = vpop.f32.mrb[2].mxu0 }
 0x184   : > { %v589_v52 = vpop.f32.mrb[3].mxu0 }
 0x185   : > { %v449_v53 = vadd.f32 %v587_v50, %v448_v44 }
 0x187   : > { %455 = vst.msk [vmem:[%s134_s17] sm:$0xff] %vm454_vm4, %v449_v53 }
 0x188   : > { %708 = shalt.err (!%p705_p3)
}
 0x189   : > { %s709_s29 = scalar_lea.hbm %s922_s24, 128  ;;  %s713_s4 = scalar_lea.hbm %s966_s2, 256 }
 0x18a   : > { %p710_p4 = scmp.ne.s32.totalorder %s922_s24, %s709_s29  ;;  %p714_p9 = scmp.lt.u32.totalorder %s922_s24, %s966_s2 }
 0x18b   : > { %p715_p10 = scmp.lt.u32.totalorder %s713_s4, %s709_s29  ;;  %p717_p12 = scmp.lt.u32.totalorder %s709_s29, %s922_s24 }
 0x18c   : > { %p711_p7 = pnand %p710_p4, %p818_p5 }
 0x18d   : > { %p716_p11 = por %p715_p10, %p714_p9 }
 0x18e   : > { %p712_p8 = pneg %p711_p7 }
 0x18f   : > { %p718_p13 = por %p717_p12, %p716_p11 }
 0x191   : > { %p719_p0 = pnand %p718_p13, %p712_p8 }
 0x193   : > { %722 = shalt.err (!%p719_p0)
}
 0x194   : > { %620 = dma.vmem_to_hbm [thread:$0]  (%p818_p5), %s924_s21, 128, %s922_s24, %s457_s25  }
 0x195 PF: > { %p626_p1 = scmp.ge.s32.totalorder %s757_s12, 2  ;;  %s482_s7 = sand.u32 1, %s745_s9  }
 0x196   : > { %s483_s8 = scalar_lea.sflag [#allocation4], %s482_s7 }
 0x197   : > { %p623_p2 = pnand %p626_p1, %p822_p6 }
 0x199   : > { %740 = dma.done.wait (!%p623_p2), %s483_s8, 128  }
 0x19a   : > { %742 = vsyncadd (!%p623_p2), %s483_s8, 4294967168  ;;  %p12_p3 = scmp.ge.s32.totalorder %s805_s15, 4   ;;  %s969_s9 = smov %s749_s10 }
 0x19b   : > { %s970_s10 = smov %s753_s11  ;;  %s971_s11 = smov %s816_s18 }
 0x19c   : > { %s972_s12 = smov %s805_s15  ;;  %14 = sbr.rel (!%p12_p3) target bundleno = 3 (0x3), region = 63 }
 0x1a3   :  { %488 = vsyncpa [#allocation4], 1 }
 0x1a4   :  { %490 = vsyncpa [#allocation4 + $0x1], 1 }

</bundles_post_ra>
